<compile_context>
chip_gen: v7x
topology: tpu7x:2x2x1
jax: 0.10.0
libtpu: 0.0.40
codegen_flags: <defaults>
</compile_context>

<pallas_src>
import functools
import math

import jax
import jax.numpy as jnp
from jax.experimental import pallas as pl
from jax.experimental.pallas import tpu as pltpu


def _vae_loss_kernel(coef_ref, x_ref, y_ref, mu_ref, lv_ref, out_ref, acc_ref,
                     *, tile_r, wc, rows_valid, batch, mask_last):
    i = pl.program_id(0)
    n = pl.num_programs(0)

    def tile_partial(mask_rows):
        # Stream in native dtype; widen once per tile.
        x = x_ref[...].astype(jnp.float32)
        y = y_ref[...].astype(jnp.float32)
        # PyTorch's binary_cross_entropy clamps the log terms at -100.
        log_x = jnp.maximum(jnp.log(x), -100.0)
        log_1mx = jnp.maximum(jnp.log(1.0 - x), -100.0)
        bce = -(y * log_x + (1.0 - y) * log_1mx)
        if mask_rows:
            # Only the trailing rows of the final tile can be out of bounds.
            # Keep this a select: it must discard NaN/Inf from undefined rows.
            row = jax.lax.broadcasted_iota(jnp.int32, bce.shape, 0) + i * tile_r
            bce = jnp.where(row < rows_valid, bce, 0.0)
        # Fold the (tile_r, wc) tile into an (8, wc) partial: pure VPU adds of
        # sublane groups; no cross-lane/sublane (XLU) work in the steady state.
        return jnp.sum(bce.reshape(tile_r // 8, 8, wc), axis=0)

    if mask_last:
        # mask_last implies tile_r < rows, so i == 0 is never the last step.
        @pl.when(i == 0)
        def _():
            acc_ref[...] = tile_partial(False)      # write: no zero-init pass

        @pl.when(jnp.logical_and(i > 0, i < n - 1))
        def _():
            acc_ref[...] += tile_partial(False)

        @pl.when(i == n - 1)
        def _():
            acc_ref[...] += tile_partial(True)
    else:
        part = tile_partial(False)

        @pl.when(i == 0)
        def _():
            acc_ref[...] = part                     # write: no zero-init pass

        @pl.when(i > 0)
        def _():
            acc_ref[...] += part

    @pl.when(i == n - 1)
    def _finalize():
        # Single full reduction + scalar scaling, once per kernel.
        rec = jnp.sum(acc_ref[...]) * coef_ref[0]

        # KL term (tiny; mu / log_var blocks are resident across the grid).
        mu = mu_ref[...].astype(jnp.float32)
        lv = lv_ref[...].astype(jnp.float32)
        kld = (-0.5 / batch) * jnp.sum(1.0 + lv - mu * mu - jnp.exp(lv)) * coef_ref[1]

        out_ref[0] = rec + kld
        out_ref[1] = rec
        out_ref[2] = kld


def _vmem_budget_bytes():
    """(streaming-tile budget, vmem_limit) chosen per TPU generation."""
    try:
        phys = pltpu.get_tpu_info().vmem_capacity_bytes
    except Exception:
        phys = 64 * 1024 * 1024                     # conservative default
    if phys >= 96 * 1024 * 1024:                    # v5e / v6e: 128 MiB VMEM
        return 48 * 1024 * 1024, 64 * 1024 * 1024
    return 26 * 1024 * 1024, 40 * 1024 * 1024       # v7x: 64 MiB VMEM


def _choose_tile_rows(rows, wc, itemsize_x, itemsize_y, budget_bytes):
    """Row-tile height: a multiple of 8 that (preferably) divides `rows`,
    sized so the double-buffered logits + labels tiles fit the budget."""
    per_row = wc * 2 * (itemsize_x + itemsize_y)    # 2 pipeline buffers each
    max_rows = max(8, (budget_bytes // per_row) // 8 * 8)
    if rows <= max_rows:
        return rows                                  # single tile
    t = max_rows
    while t >= max(8, max_rows // 2):                # prefer a divisor: no mask
        if rows % t == 0:
            return t
        t -= 8
    return max_rows                                  # masked final tile


def vae_loss(logits, labels, mu, log_var, rec_c, kl_c, *, tile_rows=None):
    """Returns (total_loss, rec_loss, kld_loss) as f32 scalars."""
    assert logits.shape == labels.shape
    b = logits.shape[0]
    n_elems = math.prod(logits.shape)

    # ---- build the sublane/lane-dense BCE slab (rows, wc), rows % 8 == 0 ----
    n_pad = ((n_elems + 1023) // 1024) * 1024
    wc = 128
    for cand in (512, 256):
        if n_pad % (8 * cand) == 0:
            wc = cand
            break
    rows = n_pad // wc

    x_flat = logits.reshape(-1)
    y_flat = labels.reshape(-1)
    if n_pad != n_elems:
        # x = y = 1 contributes exactly 0 BCE under the clamped-log formula.
        pad = n_pad - n_elems
        x_flat = jnp.concatenate([x_flat, jnp.ones((pad,), x_flat.dtype)])
        y_flat = jnp.concatenate([y_flat, jnp.ones((pad,), y_flat.dtype)])
    x2d = x_flat.reshape(rows, wc)
    y2d = y_flat.reshape(rows, wc)

    mu2d = mu.reshape(b, -1)
    lv2d = log_var.reshape(b, -1)
    lat = mu2d.shape[1]

    budget, vmem_limit = _vmem_budget_bytes()
    if tile_rows is None:
        tile_r = _choose_tile_rows(rows, wc, x2d.dtype.itemsize,
                                   y2d.dtype.itemsize, budget)
    else:
        tile_r = int(tile_rows)
        assert tile_r % 8 == 0 and 8 <= tile_r <= rows, (
            "tile_rows must be a multiple of 8 and <= the slab row count")

    num_tiles = pl.cdiv(rows, tile_r)
    mask_last = (rows % tile_r) != 0
    coefs = jnp.array([rec_c, kl_c], dtype=jnp.float32)

    kernel = functools.partial(_vae_loss_kernel, tile_r=tile_r, wc=wc,
                               rows_valid=rows, batch=b, mask_last=mask_last)
    smem = pltpu.MemorySpace.SMEM

    out = pl.pallas_call(
        kernel,
        out_shape=jax.ShapeDtypeStruct((3,), jnp.float32),
        grid=(num_tiles,),
        in_specs=[
            pl.BlockSpec(memory_space=smem),                   # [rec_c, kl_c]
            pl.BlockSpec((tile_r, wc), lambda i: (i, 0)),      # logits row tile
            pl.BlockSpec((tile_r, wc), lambda i: (i, 0)),      # labels row tile
            pl.BlockSpec((b, lat), lambda i: (0, 0)),          # mu (resident)
            pl.BlockSpec((b, lat), lambda i: (0, 0)),          # log_var (resident)
        ],
        out_specs=pl.BlockSpec(memory_space=smem),
        scratch_shapes=[pltpu.VMEM((8, wc), jnp.float32)],     # tiny accumulator
        compiler_params=pltpu.CompilerParams(
            dimension_semantics=("arbitrary",),    # row axis is a reduction
            vmem_limit_bytes=vmem_limit,
        ),
    )(coefs, x2d, y2d, mu2d, lv2d)

    return out[0], out[1], out[2]


def _reference(logits, labels, mu, log_var, rec_c, kl_c):
    x = logits.reshape(-1).astype(jnp.float32)
    y = labels.reshape(-1).astype(jnp.float32)
    bce = -(y * jnp.maximum(jnp.log(x), -100.0)
            + (1.0 - y) * jnp.maximum(jnp.log(1.0 - x), -100.0))
    rec = jnp.sum(bce) * rec_c
    kld = jnp.mean(-0.5 * jnp.sum(1 + log_var - mu ** 2 - jnp.exp(log_var),
                                  axis=1)) * kl_c
    return rec + kld, rec, kld


if __name__ == "__main__":
    keys = jax.random.split(jax.random.PRNGKey(0), 10)
    rec_c, kl_c = 1.0, 0.5

    def check(logits, labels, mu, log_var, rc, kc, **kw):
        got = vae_loss(logits, labels, mu, log_var, rc, kc, **kw)
        want = _reference(logits, labels, mu, log_var, rc, kc)
        for g, w in zip(got, want):
            g = jax.block_until_ready(g)
            assert jnp.allclose(g, w, rtol=2e-4, atol=1e-2), (g, w)

    # 1) Module-consistent small shapes: B=2, C=4, H=W=16, latent=32.
    B, C, H, W, L = 2, 4, 16, 16, 32
    logits = jax.random.uniform(keys[0], (B, C, H, W), jnp.float32,
                                minval=1e-4, maxval=1.0 - 1e-4)
    labels = (jax.random.uniform(keys[1], (B, C, H, W)) > 0.5).astype(jnp.float32)
    mu = jax.random.normal(keys[2], (B, L), jnp.float32)
    log_var = jax.random.normal(keys[3], (B, L), jnp.float32) * 0.1
    check(logits, labels, mu, log_var, rec_c, kl_c)

    # 2) Larger slab: auto tiling, a multi-tile grid with a dividing tile
    #    (no mask), and a non-dividing tile (mask only in the final step).
    B2, C2, H2, W2 = 4, 8, 32, 32
    logits2 = jax.random.uniform(keys[4], (B2, C2, H2, W2), jnp.float32,
                                 minval=1e-4, maxval=1.0 - 1e-4)
    labels2 = (jax.random.uniform(keys[5], (B2, C2, H2, W2)) > 0.5).astype(jnp.float32)
    mu2 = jax.random.normal(keys[6], (B2, L), jnp.float32)
    log_var2 = jax.random.normal(keys[7], (B2, L), jnp.float32) * 0.1
    check(logits2, labels2, mu2, log_var2, rec_c, kl_c)
    check(logits2, labels2, mu2, log_var2, rec_c, kl_c, tile_rows=16)
    check(logits2, labels2, mu2, log_var2, rec_c, kl_c, tile_rows=24)

    # 3) Total size not a multiple of 1024 -> exercises the zero-BCE padding.
    B3, C3, H3, W3 = 2, 1, 28, 28
    logits3 = jax.random.uniform(keys[8], (B3, C3, H3, W3), jnp.float32,
                                 minval=1e-4, maxval=1.0 - 1e-4)
    labels3 = (jax.random.uniform(keys[9], (B3, C3, H3, W3)) > 0.5).astype(jnp.float32)
    check(logits3, labels3, mu, log_var, 0.7, 1.3)

    print("KERNEL_OK")
</pallas_src>

<mosaic_0001>
module attributes {stable_mosaic.version = 11 : i64} {
  func.func @_vae_loss_kernel(%arg0: i32, %arg1: memref<2xf32, #tpu.memory_space<smem>>, %arg2: memref<8x256xf32, #tpu.memory_space<vmem>>, %arg3: memref<8x256xf32, #tpu.memory_space<vmem>>, %arg4: memref<2x32xf32, #tpu.memory_space<vmem>>, %arg5: memref<2x32xf32, #tpu.memory_space<vmem>>, %arg6: memref<3xf32, #tpu.memory_space<smem>>, %arg7: memref<8x256xf32, #tpu.memory_space<vmem>>) attributes {dimension_semantics = [#tpu.dimension_semantics<arbitrary>], iteration_bounds = array<i64: 1>, scalar_prefetch = 0 : i64, scratch_operands = 1 : i64, tpu.core_type = #tpu.core_type<tc>, window_params = [{transform_indices = @transform_0, window_bounds = array<i64: 2>}, {transform_indices = @transform_1, window_bounds = array<i64: 8, 256>}, {transform_indices = @transform_2, window_bounds = array<i64: 8, 256>}, {pipeline_mode = #tpu.pipeline_mode<synchronous>, transform_indices = @transform_3, window_bounds = array<i64: 2, 32>}, {pipeline_mode = #tpu.pipeline_mode<synchronous>, transform_indices = @transform_4, window_bounds = array<i64: 2, 32>}, {transform_indices = @transform_5, window_bounds = array<i64: 3>}]} {
    %c0 = arith.constant 0 : index
    %c0_0 = arith.constant 0 : index
    %0 = vector.load %arg2[%c0, %c0_0] : memref<8x256xf32, #tpu.memory_space<vmem>>, vector<8x256xf32>
    %c0_1 = arith.constant 0 : index
    %c0_2 = arith.constant 0 : index
    %1 = vector.load %arg3[%c0_1, %c0_2] : memref<8x256xf32, #tpu.memory_space<vmem>>, vector<8x256xf32>
    %2 = math.log %0 : vector<8x256xf32>
    %cst = arith.constant -1.000000e+02 : f32
    %3 = vector.broadcast %cst : f32 to vector<8x256xf32>
    %4 = arith.maximumf %2, %3 : vector<8x256xf32>
    %cst_3 = arith.constant 1.000000e+00 : f32
    %5 = vector.broadcast %cst_3 : f32 to vector<8x256xf32>
    %6 = arith.subf %5, %0 : vector<8x256xf32>
    %7 = math.log %6 : vector<8x256xf32>
    %cst_4 = arith.constant -1.000000e+02 : f32
    %8 = vector.broadcast %cst_4 : f32 to vector<8x256xf32>
    %9 = arith.maximumf %7, %8 : vector<8x256xf32>
    %10 = arith.mulf %1, %4 : vector<8x256xf32>
    %cst_5 = arith.constant 1.000000e+00 : f32
    %11 = vector.broadcast %cst_5 : f32 to vector<8x256xf32>
    %12 = arith.subf %11, %1 : vector<8x256xf32>
    %13 = arith.mulf %12, %9 : vector<8x256xf32>
    %14 = arith.addf %10, %13 : vector<8x256xf32>
    %cst_6 = arith.constant 0.000000e+00 : f32
    %15 = vector.broadcast %cst_6 : f32 to vector<8x256xf32>
    %16 = arith.subf %15, %14 : vector<8x256xf32>
    %17 = vector.shape_cast %16 : vector<8x256xf32> to vector<1x8x256xf32>
    %cst_7 = arith.constant dense<0.000000e+00> : vector<8x256xf32>
    %18 = vector.multi_reduction <add>, %17, %cst_7 [0] : vector<1x8x256xf32> to vector<8x256xf32>
    %c0_i32 = arith.constant 0 : i32
    %19 = arith.cmpi eq, %arg0, %c0_i32 : i32
    %20 = arith.extui %19 : i1 to i32
    %c0_i32_8 = arith.constant 0 : i32
    %21 = arith.cmpi ne, %20, %c0_i32_8 : i32
    scf.if %21 {
      %c0_13 = arith.constant 0 : index
      %c0_14 = arith.constant 0 : index
      %28 = vector.load %arg7[%c0_13, %c0_14] : memref<8x256xf32, #tpu.memory_space<vmem>>, vector<8x256xf32>
      tpu.vector_store %arg7[%c0_13, %c0_14], %18 {strides = array<i32>} : memref<8x256xf32, #tpu.memory_space<vmem>>, vector<8x256xf32>,
    } else {
    }
    %c0_i32_9 = arith.constant 0 : i32
    %22 = arith.cmpi sgt, %arg0, %c0_i32_9 : i32
    %23 = arith.extui %22 : i1 to i32
    %c0_i32_10 = arith.constant 0 : i32
    %24 = arith.cmpi ne, %23, %c0_i32_10 : i32
    scf.if %24 {
      %c0_13 = arith.constant 0 : index
      %c0_14 = arith.constant 0 : index
      %28 = vector.load %arg7[%c0_13, %c0_14] : memref<8x256xf32, #tpu.memory_space<vmem>>, vector<8x256xf32>
      %29 = arith.addf %28, %18 : vector<8x256xf32>
      %c0_15 = arith.constant 0 : index
      %c0_16 = arith.constant 0 : index
      %30 = vector.load %arg7[%c0_15, %c0_16] : memref<8x256xf32, #tpu.memory_space<vmem>>, vector<8x256xf32>
      tpu.vector_store %arg7[%c0_15, %c0_16], %29 {strides = array<i32>} : memref<8x256xf32, #tpu.memory_space<vmem>>, vector<8x256xf32>,
    } else {
    }
    %c0_i32_11 = arith.constant 0 : i32
    %25 = arith.cmpi eq, %arg0, %c0_i32_11 : i32
    %26 = arith.extui %25 : i1 to i32
    %c0_i32_12 = arith.constant 0 : i32
    %27 = arith.cmpi ne, %26, %c0_i32_12 : i32
    scf.if %27 {
      %c0_13 = arith.constant 0 : index
      %c0_14 = arith.constant 0 : index
      %28 = vector.load %arg7[%c0_13, %c0_14] : memref<8x256xf32, #tpu.memory_space<vmem>>, vector<8x256xf32>
      %29 = vector.shape_cast %28 : vector<8x256xf32> to vector<1x8x256xf32>
      %cst_15 = arith.constant dense<0.000000e+00> : vector<1xf32>
      %30 = vector.multi_reduction <add>, %29, %cst_15 [1, 2] : vector<1x8x256xf32> to vector<1xf32>
      %31 = vector.shape_cast %30 : vector<1xf32> to vector<1x1x1xf32>
      %32 = vector.extract %31[0, 0, 0] : f32 from vector<1x1x1xf32>
      %c0_16 = arith.constant 0 : index
      %33 = memref.load %arg1[%c0_16] : memref<2xf32, #tpu.memory_space<smem>>
      %34 = arith.mulf %32, %33 : f32
      %c0_17 = arith.constant 0 : index
      %c0_18 = arith.constant 0 : index
      %35 = vector.load %arg4[%c0_17, %c0_18] : memref<2x32xf32, #tpu.memory_space<vmem>>, vector<2x32xf32>
      %c0_19 = arith.constant 0 : index
      %c0_20 = arith.constant 0 : index
      %36 = vector.load %arg5[%c0_19, %c0_20] : memref<2x32xf32, #tpu.memory_space<vmem>>, vector<2x32xf32>
      %cst_21 = arith.constant 1.000000e+00 : f32
      %37 = vector.broadcast %cst_21 : f32 to vector<2x32xf32>
      %38 = arith.addf %37, %36 : vector<2x32xf32>
      %39 = arith.mulf %35, %35 : vector<2x32xf32>
      %40 = arith.subf %38, %39 : vector<2x32xf32>
      %41 = math.exp %36 : vector<2x32xf32>
      %42 = arith.subf %40, %41 : vector<2x32xf32>
      %43 = vector.shape_cast %42 : vector<2x32xf32> to vector<1x2x32xf32>
      %cst_22 = arith.constant dense<0.000000e+00> : vector<1xf32>
      %44 = vector.multi_reduction <add>, %43, %cst_22 [1, 2] : vector<1x2x32xf32> to vector<1xf32>
      %45 = vector.shape_cast %44 : vector<1xf32> to vector<1x1x1xf32>
      %46 = vector.extract %45[0, 0, 0] : f32 from vector<1x1x1xf32>
      %cst_23 = arith.constant -2.500000e-01 : f32
      %47 = arith.mulf %cst_23, %46 : f32
      %c1 = arith.constant 1 : index
      %48 = memref.load %arg1[%c1] : memref<2xf32, #tpu.memory_space<smem>>
      %49 = arith.mulf %47, %48 : f32
      %50 = arith.addf %34, %49 : f32
      %c0_24 = arith.constant 0 : index
      %51 = memref.load %arg6[%c0_24] : memref<3xf32, #tpu.memory_space<smem>>
      memref.store %50, %arg6[%c0_24] : memref<3xf32, #tpu.memory_space<smem>>
      %c1_25 = arith.constant 1 : index
      %52 = memref.load %arg6[%c1_25] : memref<3xf32, #tpu.memory_space<smem>>
      memref.store %34, %arg6[%c1_25] : memref<3xf32, #tpu.memory_space<smem>>
      %c2 = arith.constant 2 : index
      %53 = memref.load %arg6[%c2] : memref<3xf32, #tpu.memory_space<smem>>
      memref.store %49, %arg6[%c2] : memref<3xf32, #tpu.memory_space<smem>>
    } else {
    }
    return
  }
  func.func @transform_0(%arg0: i32) -> i32 {
    %c0_i32 = arith.constant 0 : i32
    %c0_i32_0 = arith.constant 0 : i32
    return %c0_i32 : i32
  }
  func.func @transform_1(%arg0: i32) -> (i32, i32) {
    %c0_i32 = arith.constant 0 : i32
    %c0_i32_0 = arith.constant 0 : i32
    return %arg0, %c0_i32 : i32, i32
  }
  func.func @transform_2(%arg0: i32) -> (i32, i32) {
    %c0_i32 = arith.constant 0 : i32
    %c0_i32_0 = arith.constant 0 : i32
    return %arg0, %c0_i32 : i32, i32
  }
  func.func @transform_3(%arg0: i32) -> (i32, i32) {
    %c0_i32 = arith.constant 0 : i32
    %c0_i32_0 = arith.constant 0 : i32
    %c0_i32_1 = arith.constant 0 : i32
    return %c0_i32, %c0_i32_0 : i32, i32
  }
  func.func @transform_4(%arg0: i32) -> (i32, i32) {
    %c0_i32 = arith.constant 0 : i32
    %c0_i32_0 = arith.constant 0 : i32
    %c0_i32_1 = arith.constant 0 : i32
    return %c0_i32, %c0_i32_0 : i32, i32
  }
  func.func @transform_5(%arg0: i32) -> i32 {
    %c0_i32 = arith.constant 0 : i32
    %c0_i32_0 = arith.constant 0 : i32
    return %c0_i32 : i32
  }
}

</mosaic_0001>

<bundles_post_ra>
// kernel: tpu_custom_call.1
= control target key start
LH: loop header
LB: loop body
LE: loop exit
PB: predicated region body
PF: predicated region fallthrough
CT: control target
= control target key end

     0   :  { %10 = vsyncpa [#allocation5], 0  ;;  %s343_s0 = inlined_call_operand.hbm [shape: f32[2], index: 0, kind: input, shape index: {}]   ;;  %s344_s1 = inlined_call_operand.hbm [shape: f32[8,256], index: 1, kind: input, shape index: {}]   ;;  %s345_s2 = inlined_call_operand.hbm [shape: f32[8,256], index: 2, kind: input, shape index: {}]   ;;  %s346_s3 = inlined_call_operand.vmem [shape: f32[2,32], index: 3, kind: input, shape index: {}]   ;;  %s347_s4 = inlined_call_operand.vmem [shape: f32[2,32], index: 4, kind: input, shape index: {}]   ;;  %s348_s5 = inlined_call_operand.hbm [shape: f32[3], index: 5, kind: output, shape index: {}]  }
   0x1   :  { %11 = vsyncpa [#allocation4], 0 }
   0x2   :  { %12 = vsyncpa [#allocation9], 0 }
   0x3   :  { %13 = vsyncpa [#allocation6], 0  ;;  %s183_s20 = scalar_lea.hbm %s343_s0, 16 }
   0x4   :  { %p184_p0 = scmp.ne.s32.totalorder %s343_s0, %s183_s20  ;;  %p187_p1 = scmp.lt.u32.totalorder %s183_s20, %s343_s0 }
   0x6   :  { %p189_p2 = pnand %p187_p1, %p184_p0 }
   0x8   :  { %192 = shalt.err (!%p189_p2)
}
   0x9   :  { %s255_s25 = smov [#allocation3]   ;;  %s256_s28 = smov [#allocation7]  }
   0xa   :  { %21 = dma.hbm_to_smem %s343_s0, 16, %s255_s25, [#allocation5]  }
   0xb   :  { %s28_s29 = sshll.u32 %s256_s28, 4  ;;  %s257_s30 = smov [#allocation8]   ;;  %s29_s29 = int_to_ptr.vmem [resolvable:$true] %s28_s29 }
   0xc   :  { %s38_s6 = sshll.u32 %s257_s30, 4  ;;  %s193_s9 = scalar_lea.hbm %s344_s1, 256  ;;  %s39_s6 = int_to_ptr.vmem [resolvable:$true] %s38_s6 }
   0xd   :  { %p194_p3 = scmp.ne.s32.totalorder %s344_s1, %s193_s9  ;;  %p197_p4 = scmp.lt.u32.totalorder %s193_s9, %s344_s1 }
   0xf   :  { %p199_p5 = pnand %p197_p4, %p194_p3 }
  0x11   :  { %202 = shalt.err (!%p199_p5)
}
  0x12   :  { %s203_s0 = scalar_lea.vmem %s29_s29, 256  ;;  %p208_p7 = scmp.lt.s32.totalorder %s29_s29, %s29_s29 }
  0x13   :  { %p204_p6 = scmp.ne.s32.totalorder %s29_s29, %s203_s0  ;;  %p209_p8 = scmp.lt.s32.totalorder %s203_s0, %s203_s0 }
  0x15   :  { %p210_p9 = por %p209_p8, %p208_p7 }
  0x17   :  { %p211_p10 = pnand %p210_p9, %p204_p6 }
  0x19   :  { %214 = shalt.err (!%p211_p10)
}
  0x1a   :  { %31 = dma.hbm_to_vmem [thread:$0]  %s344_s1, 256, %s29_s29, [#allocation4]  }
  0x1b   :  { %s215_s18 = scalar_lea.hbm %s345_s2, 256 }
  0x1c   :  { %p216_p11 = scmp.ne.s32.totalorder %s345_s2, %s215_s18  ;;  %p219_p12 = scmp.lt.u32.totalorder %s215_s18, %s345_s2 }
  0x1e   :  { %p221_p13 = pnand %p219_p12, %p216_p11 }
  0x20   :  { %224 = shalt.err (!%p221_p13)
}
  0x21   :  { %s225_s23 = scalar_lea.vmem %s39_s6, 256  ;;  %p230_p1 = scmp.lt.s32.totalorder %s39_s6, %s39_s6 }
  0x22   :  { %p226_p0 = scmp.ne.s32.totalorder %s39_s6, %s225_s23  ;;  %p231_p2 = scmp.lt.s32.totalorder %s225_s23, %s225_s23 }
  0x24   :  { %p232_p3 = por %p231_p2, %p230_p1 }
  0x26   :  { %p233_p4 = pnand %p232_p3, %p226_p0 }
  0x28   :  { %236 = shalt.err (!%p233_p4)
}
  0x29   :  { %41 = dma.hbm_to_vmem [thread:$0]  %s345_s2, 256, %s39_s6, [#allocation9]  }
  0x2a   :  { %247 = dma.done.wait [#allocation5], 16  }
  0x2b   :  { %248 = vsyncadd [#allocation5], 4294967280 }
  0x2c   :  { %249 = dma.done.wait [#allocation4], 256  }
  0x2d   :  { %250 = vsyncadd [#allocation4], 4294967040 }
  0x2e   :  { %251 = dma.done.wait [#allocation9], 256  }
  0x2f   :  { %252 = vsyncadd [#allocation9], 4294967040 }
  0x30   :  { %55 = sfence }
  0x31   :  { %v56_v0 = vld [vmem:[#allocation7] sm:$0xff]  ;;  %v57_v1 = vld [vmem:[#allocation7 + $0x8] sm:$0xff]  ;;  %v120_v4 = vld [vmem:[%s347_s4] sm:$0x3]  ;;  %vm127_vm0 = vcmask 254976   ;;  %s164_s4 = sld [smem:[#allocation3 + $0x1]] }
  0x32   :  { %173 = vlog2.f32 %v56_v0  ;;  %v66_v2 = vsub.f32 1.0, %v56_v0  ;;  %v67_v3 = vsub.f32 1.0, %v57_v1  ;;  %v124_v5 = vmul.f32 1.442695, %v120_v4  ;;  %v58_v7 = vld [vmem:[#allocation8] sm:$0xff]  ;;  %v59_v9 = vld [vmem:[#allocation8 + $0x8] sm:$0xff] }
  0x33   :  { %175 = vlog2.f32 %v57_v1  ;;  %v119_v13 = vld [vmem:[%s346_s3] sm:$0x3]  ;;  %v76_v17 = vsub.f32 1.0, %v58_v7  ;;  %v77_v20 = vsub.f32 1.0, %v59_v9  ;;  %v121_v23 = vadd.f32 1.0, %v120_v4  ;;  %s117_s3 = sld [smem:[#allocation3]] }
  0x34   :  { %177 = vlog2.f32 %v66_v2  ;;  %v122_v24 = vmul.f32 %v119_v13, %v119_v13  ;;  %s237_s11 = scalar_lea.hbm %s348_s5, 16 }
  0x35   :  { %179 = vlog2.f32 %v67_v3  ;;  %p238_p5 = scmp.ne.s32.totalorder %s348_s5, %s237_s11  ;;  %p241_p6 = scmp.lt.u32.totalorder %s237_s11, %s348_s5 }
  0x36   :  { %181 = vpow2.f32 %v124_v5  ;;  %v123_v30 = vsub.f32 %v121_v23, %v122_v24 }
  0x37   :  { %p243_p7 = pnand %p241_p6, %p238_p5 }
  0x3c   :  { %v174_v6 = vpop.eup %173 }
  0x3d   :  { %v176_v8 = vpop.eup %175  ;;  %v61_v10 = vmul.f32 0.6931472, %v174_v6 }
  0x3e   :  { %v178_v11 = vpop.eup %177  ;;  %v63_v12 = vmul.f32 0.6931472, %v176_v8 }
  0x3f   :  { %v180_v14 = vpop.eup %179  ;;  %v64_v15 = vmax.f32 %v61_v10, -100.0  ;;  %v69_v16 = vmul.f32 0.6931472, %v178_v11 }
  0x40   :  { %v65_v18 = vmax.f32 %v63_v12, -100.0  ;;  %v71_v19 = vmul.f32 0.6931472, %v180_v14  ;;  %v182_v31 = vpop.eup %181 }
  0x41   :  { %v72_v21 = vmax.f32 %v69_v16, -100.0  ;;  %v74_v22 = vmul.f32 %v64_v15, %v58_v7  ;;  %v126_v35 = vsub.f32 %v123_v30, %v182_v31 }
  0x42   :  { %v73_v25 = vmax.f32 %v71_v19, -100.0  ;;  %v75_v26 = vmul.f32 %v65_v18, %v59_v9 }
  0x43   :  { %v78_v27 = vmul.f32 %v76_v17, %v72_v21  ;;  %v128_v37 = vsel %vm127_vm0, %v126_v35, 0.0 }
  0x44   :  { %v79_v28 = vmul.f32 %v77_v20, %v73_v25 }
  0x45   :  { %v80_v29 = vadd.f32 %v78_v27, %v74_v22 }
  0x46   :  { %v81_v32 = vadd.f32 %v79_v28, %v75_v26 }
  0x47   :  { %v82_v33 = vsub.f32 0.0, %v80_v29 }
  0x48   :  { %v83_v34 = vsub.f32 0.0, %v81_v32 }
  0x4a   :  { %v107_v36 = vadd.f32 %v83_v34, %v82_v33 }
  0x4c   :  { %108 = vadd.xlane.f32.xlu0 %v107_v36 }
  0x50   :  { %129 = vadd.xlane.f32.xlu0 %v128_v37 }
  0xd9   :  { %v109_v38 = vpop.xlane.xlu0 %108 }
  0xda   :  { %v110_v39 = vrot.slane %v109_v38, 4 }
  0xdc   :  { %v111_v40 = vadd.f32 %v110_v39, %v109_v38 }
  0xdd   :  { %v130_v41 = vpop.xlane.xlu0 %129 }
  0xde   :  { %v112_v42 = vrot.slane %v111_v40, 2  ;;  %v131_v43 = vrot.slane %v130_v41, 4 }
  0xe0   :  { %v132_v44 = vadd.f32 %v131_v43, %v130_v41  ;;  %v113_v45 = vadd.f32 %v112_v42, %v111_v40 }
  0xe2   :  { %v133_v46 = vrot.slane %v132_v44, 2  ;;  %v114_v47 = vrot.slane %v113_v45, 1 }
  0xe4   :  { %v134_v48 = vadd.f32 %v133_v46, %v132_v44  ;;  %v115_v49 = vadd.f32 %v114_v47, %v113_v45 }
  0xe6   :  { %165 = vpush %v115_v49  ;;  %v135_v50 = vrot.slane %v134_v48, 1 }
  0xe8   :  { %v136_v51 = vadd.f32 %v135_v50, %v134_v48 }
  0xea   :  { %167 = vpush %v136_v51 }
 0x117   :  { %s166_s28 = spop %165 }
 0x118   :  { %s118_s29 = smul.f32 %s166_s28, %s117_s3 }
 0x11a   :  { %145 = sst [smem:[#allocation10 + $0x1]] %s118_s29 }
 0x11b   :  { %s168_s30 = spop %167 }
 0x11c   :  { %s138_s6 = smul.f32 -0.25, %s168_s30 }
 0x11e   :  { %s140_s7 = smul.f32 %s164_s4, %s138_s6 }
 0x120   :  { %s141_s8 = sadd.f32 %s140_s7, %s118_s29 }
 0x121   :  { %147 = sst [smem:[#allocation10 + $0x2]] %s140_s7 }
 0x122   :  { %143 = sst [smem:[#allocation10]] %s141_s8 }
 0x123   :  { %246 = shalt.err (!%p243_p7)
}
 0x124   :  { %s258_s15 = smov [#allocation10]  }
 0x125   :  { %155 = dma.smem_to_hbm %s258_s15, 16, %s348_s5, [#allocation6]  }
 0x126   :  { %253 = dma.done.wait [#allocation6], 16  }
 0x127   :  { %254 = vsyncadd [#allocation6], 4294967280 }
 0x128   :  { %159 = sfence }
 0x129   :  { %160 = vsyncpa [#allocation4], 1 }
 0x12a   :  { %161 = vsyncpa [#allocation9], 1 }
 0x12b   :  { %162 = vsyncpa [#allocation5], 1 }
 0x12c   :  { %163 = vsyncpa [#allocation6], 1 }

</bundles_post_ra>
